<compile_context>
chip_gen: v5e
topology: v5e:2x2
jax: 0.10.0
libtpu: 0.0.40
codegen_flags: <defaults>
</compile_context>

<pallas_src>
import math
from functools import partial

import jax
import jax.numpy as jnp
from jax.experimental import pallas as pl
from jax.experimental.pallas import tpu as pltpu


# ----------------------------------------------------------------------------
# Fused kernel: proto_slim + dual graph attention + score epilogue
# ----------------------------------------------------------------------------
def _fused_kernel(img_ref, proto_ref, attrs_ref, g_att_ref, g_img_ref,
                  slim_w_ref, slim_b_ref, img_w_ref, w_att_ref, w_img_ref,
                  proto_b_ref, fc_w_ref, fc_b_ref,
                  out_ref,
                  att_outs_s, proto_outs_s, img_proj_s,
                  *, thresh, temperature, c_blk):
    c_idx = pl.program_id(1)

    # ---- propagation: run once per B-tile (first step of the inner C axis) --
    @pl.when(c_idx == 0)
    def _init():
        attrs = attrs_ref[...]                                            # (C, A)
        # self.proto_slim : Linear(image_dim -> att_dim) on the image protos
        proto = (jnp.dot(proto_ref[...], slim_w_ref[...],
                         preferred_element_type=jnp.float32)
                 + slim_b_ref[...])                                       # (C, A)

        def graph_attention(feats, g_w):
            # get_attention: project, cosine similarity (contract last-vs-last
            # on the MXU, no transpose), threshold, softmax(* T), propagate.
            g = jnp.dot(feats, g_w, preferred_element_type=jnp.float32)   # (C, G)
            g_n = g * jax.lax.rsqrt(
                jnp.sum(g * g, axis=-1, keepdims=True) + 1e-12)
            sim = jax.lax.dot_general(g_n, g_n, (((1,), (1,)), ((), ())),
                                      preferred_element_type=jnp.float32)  # (C, C)
            raw = jnp.where(sim > thresh, sim, jnp.full_like(sim, -9e15))
            raw = raw * temperature
            e = jnp.exp(raw - jnp.max(raw, axis=-1, keepdims=True))
            inv_den = pl.reciprocal(jnp.sum(e, axis=-1, keepdims=True),
                                    approx=True)                          # EUP
            attn = e * inv_den
            return jnp.dot(attn, feats, preferred_element_type=jnp.float32)

        att_outs_s[...] = graph_attention(attrs, g_att_ref[...])          # (C, A)
        proto_outs_s[...] = graph_attention(proto, g_img_ref[...])        # (C, A)
        img_proj_s[...] = jnp.dot(img_ref[...], img_w_ref[...],
                                  preferred_element_type=jnp.float32)     # (b_blk, H)

    # ---- score epilogue for the current (B-tile, C-tile) -------------------
    c0 = pl.multiple_of(c_idx * c_blk, c_blk)
    att_blk = att_outs_s[pl.ds(c0, c_blk), :]                             # (c_blk, A)
    pro_blk = proto_outs_s[pl.ds(c0, c_blk), :]                           # (c_blk, A)
    # outs @ proto_w without the concat: split-weight matmuls.
    proto_proj = (jnp.dot(att_blk, w_att_ref[...],
                          preferred_element_type=jnp.float32)
                  + jnp.dot(pro_blk, w_img_ref[...],
                            preferred_element_type=jnp.float32)
                  + proto_b_ref[...])                                     # (c_blk, H)
    hidden = jnp.maximum(
        img_proj_s[...][:, None, :] + proto_proj[None, :, :], 0.0)        # (b,c,H)
    # fc : Linear(hidden_C -> 1) as a lane reduction against fc_w.
    out_ref[...] = (jnp.sum(hidden * fc_w_ref[...][None, :, :], axis=-1)
                    + fc_b_ref[0, 0])                                     # (b_blk, c_blk)


# ----------------------------------------------------------------------------
# Wrapper
# ----------------------------------------------------------------------------
def dualpn_forward(image_feats, img_proto, attributes, params, *, T, degree,
                   b_blk=None, c_blk=None):
    assert 0 <= degree < 100, f"invalid degree : {degree}"
    thresh = math.cos(math.pi * degree / 180.0)

    B, D = image_feats.shape
    C, A = attributes.shape
    H = params["img_w"].shape[1]

    if b_blk is None:
        b_blk = B if B <= 128 else 128
    if c_blk is None:
        c_blk = C if C <= 128 else 128
    assert B % b_blk == 0 and C % c_blk == 0, "B / C must be tile multiples"
    # TODO(synk): at production sizes, zero-pad A/D/H (and C) to multiples of
    # 128 and cast MXU operands to bf16 for lane-dense stores / full MXU fill.

    # Split proto_w so the kernel never concatenates [att_outs, proto_outs]:
    # outs @ proto_w == att_outs @ proto_w[:A] + proto_outs @ proto_w[A:].
    w_att = params["proto_w"][:A, :]
    w_img = params["proto_w"][A:, :]

    def _whole(shape):
        return pl.BlockSpec(shape, lambda b, c: (0, 0))

    kernel = partial(_fused_kernel, thresh=thresh, temperature=float(T),
                     c_blk=c_blk)

    return pl.pallas_call(
        kernel,
        out_shape=jax.ShapeDtypeStruct((B, C), jnp.float32),
        grid=(B // b_blk, C // c_blk),
        in_specs=[
            pl.BlockSpec((b_blk, D), lambda b, c: (b, 0)),     # image_feats tile
            _whole(img_proto.shape),                           # img_proto
            _whole(attributes.shape),                          # attributes
            _whole(params["att_g_att"].shape),                 # att_g_att
            _whole(params["att_g_img"].shape),                 # att_g_img
            _whole(params["slim_w"].shape),                    # proto_slim W^T
            _whole(params["slim_b"].shape),                    # proto_slim bias
            _whole(params["img_w"].shape),                     # img_w
            _whole(w_att.shape),                               # proto_w[:A]
            _whole(w_img.shape),                               # proto_w[A:]
            _whole(params["proto_b"].shape),                   # proto_b
            _whole(params["fc_w"].shape),                      # fc weight (1,H)
            pl.BlockSpec(memory_space=pltpu.MemorySpace.SMEM), # fc bias scalar
        ],
        out_specs=pl.BlockSpec((b_blk, c_blk), lambda b, c: (b, c)),
        scratch_shapes=[
            pltpu.VMEM((C, A), jnp.float32),       # att_outs   (persists over C axis)
            pltpu.VMEM((C, A), jnp.float32),       # proto_outs (persists over C axis)
            pltpu.VMEM((b_blk, H), jnp.float32),   # image_feats @ img_w for this B-tile
        ],
        compiler_params=pltpu.CompilerParams(
            dimension_semantics=("parallel", "arbitrary")),
    )(image_feats, img_proto, attributes,
      params["att_g_att"], params["att_g_img"],
      params["slim_w"], params["slim_b"], params["img_w"],
      w_att, w_img, params["proto_b"], params["fc_w"], params["fc_b"])


# ----------------------------------------------------------------------------
# Deterministic synthetic parameters (kaiming-uniform-style bounds)
# ----------------------------------------------------------------------------
def init_params(key, att_dim, image_dim, att_hC, hidden_C):
    ks = jax.random.split(key, 9)

    def ku(k, shape, fan_in):
        b = 1.0 / math.sqrt(fan_in)
        return jax.random.uniform(k, shape, jnp.float32, -b, b)

    return dict(
        att_g_att=ku(ks[0], (att_dim, att_hC), att_hC),
        att_g_img=ku(ks[1], (att_dim, att_hC), att_hC),
        slim_w=ku(ks[2], (image_dim, att_dim), image_dim),   # proto_slim weight^T
        slim_b=ku(ks[3], (1, att_dim), image_dim),
        img_w=ku(ks[4], (image_dim, hidden_C), hidden_C),
        proto_w=ku(ks[5], (2 * att_dim, hidden_C), hidden_C),
        proto_b=ku(ks[6], (1, hidden_C), hidden_C),
        fc_w=ku(ks[7], (1, hidden_C), hidden_C),             # Linear(hidden_C, 1) weight
        fc_b=ku(ks[8], (1, 1), hidden_C),
    )


# ----------------------------------------------------------------------------
# Pure-JAX reference (mirrors the PyTorch forward of DualPN_DualAttDiff)
# ----------------------------------------------------------------------------
def dualpn_reference(image_feats, img_proto, attributes, params, *, T, degree):
    thresh = math.cos(math.pi * degree / 180.0)

    def graph_attention(feats, g_w):
        g = feats @ g_w
        g_n = g / jnp.sqrt(jnp.sum(g * g, axis=-1, keepdims=True) + 1e-12)
        sim = g_n @ g_n.T
        raw = jnp.where(sim > thresh, sim, jnp.full_like(sim, -9e15))
        attn = jax.nn.softmax(raw * T, axis=1)
        return attn @ feats

    proto = img_proto @ params["slim_w"] + params["slim_b"]            # proto_slim
    att_outs = graph_attention(attributes, params["att_g_att"])
    proto_outs = graph_attention(proto, params["att_g_img"])
    outs = jnp.concatenate([att_outs, proto_outs], axis=1)             # (C, 2A)

    img_proj = image_feats @ params["img_w"]                           # (B, H)
    proto_proj = outs @ params["proto_w"] + params["proto_b"]          # (C, H)
    hidden = jax.nn.relu(img_proj[:, None, :] + proto_proj[None, :, :])
    return (jnp.sum(hidden * params["fc_w"][None, :, :], axis=-1)
            + params["fc_b"][0, 0])                                    # (B, C)


# ----------------------------------------------------------------------------
if __name__ == "__main__":
    # Small shapes consistent with the module's forward
    batch, cls_num = 16, 8
    att_dim, image_dim, att_hC, hidden_C = 16, 32, 16, 32
    T, degree = 5.0, 40

    key = jax.random.PRNGKey(0)
    k_img, k_proto, k_attr, k_params = jax.random.split(key, 4)

    image_feats = jax.random.normal(k_img, (batch, image_dim), jnp.float32)
    img_proto = jax.random.normal(k_proto, (cls_num, image_dim), jnp.float32)
    attributes = jax.random.normal(k_attr, (cls_num, att_dim), jnp.float32)
    params = init_params(k_params, att_dim, image_dim, att_hC, hidden_C)

    # b_blk=8 -> grid (2, 1): exercises B-tiling and the per-tile init path.
    out = dualpn_forward(image_feats, img_proto, attributes, params,
                         T=T, degree=degree, b_blk=8)
    out = jax.block_until_ready(out)

    ref = dualpn_reference(image_feats, img_proto, attributes, params,
                           T=T, degree=degree)
    assert out.shape == (batch, cls_num)
    max_err = float(jnp.max(jnp.abs(out - ref)))
    # tolerance slightly loosened for the EUP approximate reciprocal in softmax
    assert jnp.allclose(out, ref, atol=5e-3, rtol=5e-3), \
        f"mismatch vs reference (max abs err {max_err:.3e})"

    print("KERNEL_OK")
</pallas_src>

<mosaic_0001>
module attributes {stable_mosaic.version = 11 : i64} {
  func.func @_fused_kernel(%arg0: i32, %arg1: i32, %arg2: memref<8x32xf32, #tpu.memory_space<vmem>>, %arg3: memref<8x32xf32, #tpu.memory_space<vmem>>, %arg4: memref<8x16xf32, #tpu.memory_space<vmem>>, %arg5: memref<16x16xf32, #tpu.memory_space<vmem>>, %arg6: memref<16x16xf32, #tpu.memory_space<vmem>>, %arg7: memref<32x16xf32, #tpu.memory_space<vmem>>, %arg8: memref<1x16xf32, #tpu.memory_space<vmem>>, %arg9: memref<32x32xf32, #tpu.memory_space<vmem>>, %arg10: memref<16x32xf32, #tpu.memory_space<vmem>>, %arg11: memref<16x32xf32, #tpu.memory_space<vmem>>, %arg12: memref<1x32xf32, #tpu.memory_space<vmem>>, %arg13: memref<1x32xf32, #tpu.memory_space<vmem>>, %arg14: memref<1x1xf32, #tpu.memory_space<smem>>, %arg15: memref<8x8xf32, #tpu.memory_space<vmem>>, %arg16: memref<8x16xf32, #tpu.memory_space<vmem>>, %arg17: memref<8x16xf32, #tpu.memory_space<vmem>>, %arg18: memref<8x32xf32, #tpu.memory_space<vmem>>) attributes {dimension_semantics = [#tpu.dimension_semantics<parallel>, #tpu.dimension_semantics<arbitrary>], iteration_bounds = array<i64: 2, 1>, scalar_prefetch = 0 : i64, scratch_operands = 3 : i64, tpu.core_type = #tpu.core_type<tc>, window_params = [{transform_indices = @transform_0, window_bounds = array<i64: 8, 32>}, {pipeline_mode = #tpu.pipeline_mode<synchronous>, transform_indices = @transform_1, window_bounds = array<i64: 8, 32>}, {pipeline_mode = #tpu.pipeline_mode<synchronous>, transform_indices = @transform_2, window_bounds = array<i64: 8, 16>}, {pipeline_mode = #tpu.pipeline_mode<synchronous>, transform_indices = @transform_3, window_bounds = array<i64: 16, 16>}, {pipeline_mode = #tpu.pipeline_mode<synchronous>, transform_indices = @transform_4, window_bounds = array<i64: 16, 16>}, {pipeline_mode = #tpu.pipeline_mode<synchronous>, transform_indices = @transform_5, window_bounds = array<i64: 32, 16>}, {pipeline_mode = #tpu.pipeline_mode<synchronous>, transform_indices = @transform_6, window_bounds = array<i64: 1, 16>}, {pipeline_mode = #tpu.pipeline_mode<synchronous>, transform_indices = @transform_7, window_bounds = array<i64: 32, 32>}, {pipeline_mode = #tpu.pipeline_mode<synchronous>, transform_indices = @transform_8, window_bounds = array<i64: 16, 32>}, {pipeline_mode = #tpu.pipeline_mode<synchronous>, transform_indices = @transform_9, window_bounds = array<i64: 16, 32>}, {pipeline_mode = #tpu.pipeline_mode<synchronous>, transform_indices = @transform_10, window_bounds = array<i64: 1, 32>}, {pipeline_mode = #tpu.pipeline_mode<synchronous>, transform_indices = @transform_11, window_bounds = array<i64: 1, 32>}, {transform_indices = @transform_12, window_bounds = array<i64: 1, 1>}, {transform_indices = @transform_13, window_bounds = array<i64: 8, 8>}]} {
    %c0_i32 = arith.constant 0 : i32
    %0 = arith.cmpi eq, %arg1, %c0_i32 : i32
    %1 = arith.extui %0 : i1 to i32
    %c0_i32_0 = arith.constant 0 : i32
    %2 = arith.cmpi ne, %1, %c0_i32_0 : i32
    scf.if %2 {
      %c0_19 = arith.constant 0 : index
      %c0_20 = arith.constant 0 : index
      %34 = vector.load %arg4[%c0_19, %c0_20] : memref<8x16xf32, #tpu.memory_space<vmem>>, vector<8x16xf32>
      %c0_21 = arith.constant 0 : index
      %c0_22 = arith.constant 0 : index
      %35 = vector.load %arg3[%c0_21, %c0_22] : memref<8x32xf32, #tpu.memory_space<vmem>>, vector<8x32xf32>
      %c0_23 = arith.constant 0 : index
      %c0_24 = arith.constant 0 : index
      %36 = vector.load %arg7[%c0_23, %c0_24] : memref<32x16xf32, #tpu.memory_space<vmem>>, vector<32x16xf32>
      %cst_25 = arith.constant dense<0.000000e+00> : vector<8x16xf32>
      %37 = tpu.matmul %35, %36, %cst_25 {dimension_numbers = #tpu.dot_dimension_numbers<[1], [0], [0], [1], [0, 0, 1, 1], [], []>} : vector<8x32xf32>, vector<32x16xf32>, vector<8x16xf32> -> vector<8x16xf32>
      %c0_26 = arith.constant 0 : index
      %c0_27 = arith.constant 0 : index
      %38 = vector.load %arg8[%c0_26, %c0_27] : memref<1x16xf32, #tpu.memory_space<vmem>>, vector<1x16xf32>
      %39 = vector.broadcast %38 : vector<1x16xf32> to vector<8x16xf32>
      %40 = arith.addf %37, %39 : vector<8x16xf32>
      %c0_28 = arith.constant 0 : index
      %c0_29 = arith.constant 0 : index
      %41 = vector.load %arg5[%c0_28, %c0_29] : memref<16x16xf32, #tpu.memory_space<vmem>>, vector<16x16xf32>
      %cst_30 = arith.constant dense<0.000000e+00> : vector<8x16xf32>
      %42 = tpu.matmul %34, %41, %cst_30 {dimension_numbers = #tpu.dot_dimension_numbers<[1], [0], [0], [1], [0, 0, 1, 1], [], []>} : vector<8x16xf32>, vector<16x16xf32>, vector<8x16xf32> -> vector<8x16xf32>
      %43 = arith.mulf %42, %42 : vector<8x16xf32>
      %cst_31 = arith.constant dense<0.000000e+00> : vector<8xf32>
      %44 = vector.multi_reduction <add>, %43, %cst_31 [1] : vector<8x16xf32> to vector<8xf32>
      %45 = vector.shape_cast %44 : vector<8xf32> to vector<8x1xf32>
      %cst_32 = arith.constant 9.99999996E-13 : f32
      %46 = vector.broadcast %cst_32 : f32 to vector<8x1xf32>
      %47 = arith.addf %45, %46 : vector<8x1xf32>
      %48 = math.rsqrt %47 : vector<8x1xf32>
      %49 = vector.broadcast %48 : vector<8x1xf32> to vector<8x16xf32>
      %50 = arith.mulf %42, %49 : vector<8x16xf32>
      %cst_33 = arith.constant dense<0.000000e+00> : vector<8x8xf32>
      %51 = tpu.matmul %50, %50, %cst_33 {dimension_numbers = #tpu.dot_dimension_numbers<[1], [1], [0], [0], [0, 0, 1, 0], [], []>} : vector<8x16xf32>, vector<8x16xf32>, vector<8x8xf32> -> vector<8x8xf32>
      %cst_34 = arith.constant 0.766044437 : f32
      %52 = vector.broadcast %cst_34 : f32 to vector<8x8xf32>
      %53 = arith.cmpf ogt, %51, %52 : vector<8x8xf32>
      %cst_35 = arith.constant -9.000000e+15 : f32
      %54 = vector.broadcast %cst_35 : f32 to vector<8x8xf32>
      %55 = arith.select %53, %51, %54 : vector<8x8xi1>, vector<8x8xf32>
      %cst_36 = arith.constant 5.000000e+00 : f32
      %56 = vector.broadcast %cst_36 : f32 to vector<8x8xf32>
      %57 = arith.mulf %55, %56 : vector<8x8xf32>
      %cst_37 = arith.constant dense<0xFF800000> : vector<8xf32>
      %58 = vector.multi_reduction <maximumf>, %57, %cst_37 [1] : vector<8x8xf32> to vector<8xf32>
      %59 = vector.shape_cast %58 : vector<8xf32> to vector<8x1xf32>
      %60 = vector.broadcast %59 : vector<8x1xf32> to vector<8x8xf32>
      %61 = arith.subf %57, %60 : vector<8x8xf32>
      %62 = math.exp %61 : vector<8x8xf32>
      %cst_38 = arith.constant dense<0.000000e+00> : vector<8xf32>
      %63 = vector.multi_reduction <add>, %62, %cst_38 [1] : vector<8x8xf32> to vector<8xf32>
      %64 = vector.shape_cast %63 : vector<8xf32> to vector<8x1xf32>
      %65 = tpu.reciprocal %64 {approx = true} : vector<8x1xf32> -> vector<8x1xf32>
      %66 = vector.broadcast %65 : vector<8x1xf32> to vector<8x8xf32>
      %67 = arith.mulf %62, %66 : vector<8x8xf32>
      %cst_39 = arith.constant dense<0.000000e+00> : vector<8x16xf32>
      %68 = tpu.matmul %67, %34, %cst_39 {dimension_numbers = #tpu.dot_dimension_numbers<[1], [0], [0], [1], [0, 0, 1, 1], [], []>} : vector<8x8xf32>, vector<8x16xf32>, vector<8x16xf32> -> vector<8x16xf32>
      %c0_40 = arith.constant 0 : index
      %c0_41 = arith.constant 0 : index
      %69 = vector.load %arg16[%c0_40, %c0_41] : memref<8x16xf32, #tpu.memory_space<vmem>>, vector<8x16xf32>
      tpu.vector_store %arg16[%c0_40, %c0_41], %68 {strides = array<i32>} : memref<8x16xf32, #tpu.memory_space<vmem>>, vector<8x16xf32>,
      %c0_42 = arith.constant 0 : index
      %c0_43 = arith.constant 0 : index
      %70 = vector.load %arg6[%c0_42, %c0_43] : memref<16x16xf32, #tpu.memory_space<vmem>>, vector<16x16xf32>
      %cst_44 = arith.constant dense<0.000000e+00> : vector<8x16xf32>
      %71 = tpu.matmul %40, %70, %cst_44 {dimension_numbers = #tpu.dot_dimension_numbers<[1], [0], [0], [1], [0, 0, 1, 1], [], []>} : vector<8x16xf32>, vector<16x16xf32>, vector<8x16xf32> -> vector<8x16xf32>
      %72 = arith.mulf %71, %71 : vector<8x16xf32>
      %cst_45 = arith.constant dense<0.000000e+00> : vector<8xf32>
      %73 = vector.multi_reduction <add>, %72, %cst_45 [1] : vector<8x16xf32> to vector<8xf32>
      %74 = vector.shape_cast %73 : vector<8xf32> to vector<8x1xf32>
      %cst_46 = arith.constant 9.99999996E-13 : f32
      %75 = vector.broadcast %cst_46 : f32 to vector<8x1xf32>
      %76 = arith.addf %74, %75 : vector<8x1xf32>
      %77 = math.rsqrt %76 : vector<8x1xf32>
      %78 = vector.broadcast %77 : vector<8x1xf32> to vector<8x16xf32>
      %79 = arith.mulf %71, %78 : vector<8x16xf32>
      %cst_47 = arith.constant dense<0.000000e+00> : vector<8x8xf32>
      %80 = tpu.matmul %79, %79, %cst_47 {dimension_numbers = #tpu.dot_dimension_numbers<[1], [1], [0], [0], [0, 0, 1, 0], [], []>} : vector<8x16xf32>, vector<8x16xf32>, vector<8x8xf32> -> vector<8x8xf32>
      %cst_48 = arith.constant 0.766044437 : f32
      %81 = vector.broadcast %cst_48 : f32 to vector<8x8xf32>
      %82 = arith.cmpf ogt, %80, %81 : vector<8x8xf32>
      %cst_49 = arith.constant -9.000000e+15 : f32
      %83 = vector.broadcast %cst_49 : f32 to vector<8x8xf32>
      %84 = arith.select %82, %80, %83 : vector<8x8xi1>, vector<8x8xf32>
      %cst_50 = arith.constant 5.000000e+00 : f32
      %85 = vector.broadcast %cst_50 : f32 to vector<8x8xf32>
      %86 = arith.mulf %84, %85 : vector<8x8xf32>
      %cst_51 = arith.constant dense<0xFF800000> : vector<8xf32>
      %87 = vector.multi_reduction <maximumf>, %86, %cst_51 [1] : vector<8x8xf32> to vector<8xf32>
      %88 = vector.shape_cast %87 : vector<8xf32> to vector<8x1xf32>
      %89 = vector.broadcast %88 : vector<8x1xf32> to vector<8x8xf32>
      %90 = arith.subf %86, %89 : vector<8x8xf32>
      %91 = math.exp %90 : vector<8x8xf32>
      %cst_52 = arith.constant dense<0.000000e+00> : vector<8xf32>
      %92 = vector.multi_reduction <add>, %91, %cst_52 [1] : vector<8x8xf32> to vector<8xf32>
      %93 = vector.shape_cast %92 : vector<8xf32> to vector<8x1xf32>
      %94 = tpu.reciprocal %93 {approx = true} : vector<8x1xf32> -> vector<8x1xf32>
      %95 = vector.broadcast %94 : vector<8x1xf32> to vector<8x8xf32>
      %96 = arith.mulf %91, %95 : vector<8x8xf32>
      %cst_53 = arith.constant dense<0.000000e+00> : vector<8x16xf32>
      %97 = tpu.matmul %96, %40, %cst_53 {dimension_numbers = #tpu.dot_dimension_numbers<[1], [0], [0], [1], [0, 0, 1, 1], [], []>} : vector<8x8xf32>, vector<8x16xf32>, vector<8x16xf32> -> vector<8x16xf32>
      %c0_54 = arith.constant 0 : index
      %c0_55 = arith.constant 0 : index
      %98 = vector.load %arg17[%c0_54, %c0_55] : memref<8x16xf32, #tpu.memory_space<vmem>>, vector<8x16xf32>
      tpu.vector_store %arg17[%c0_54, %c0_55], %97 {strides = array<i32>} : memref<8x16xf32, #tpu.memory_space<vmem>>, vector<8x16xf32>,
      %c0_56 = arith.constant 0 : index
      %c0_57 = arith.constant 0 : index
      %99 = vector.load %arg2[%c0_56, %c0_57] : memref<8x32xf32, #tpu.memory_space<vmem>>, vector<8x32xf32>
      %c0_58 = arith.constant 0 : index
      %c0_59 = arith.constant 0 : index
      %100 = vector.load %arg9[%c0_58, %c0_59] : memref<32x32xf32, #tpu.memory_space<vmem>>, vector<32x32xf32>
      %cst_60 = arith.constant dense<0.000000e+00> : vector<8x32xf32>
      %101 = tpu.matmul %99, %100, %cst_60 {dimension_numbers = #tpu.dot_dimension_numbers<[1], [0], [0], [1], [0, 0, 1, 1], [], []>} : vector<8x32xf32>, vector<32x32xf32>, vector<8x32xf32> -> vector<8x32xf32>
      %c0_61 = arith.constant 0 : index
      %c0_62 = arith.constant 0 : index
      %102 = vector.load %arg18[%c0_61, %c0_62] : memref<8x32xf32, #tpu.memory_space<vmem>>, vector<8x32xf32>
      tpu.vector_store %arg18[%c0_61, %c0_62], %101 {strides = array<i32>} : memref<8x32xf32, #tpu.memory_space<vmem>>, vector<8x32xf32>,
    } else {
    }
    %c8_i32 = arith.constant 8 : i32
    %3 = arith.muli %arg1, %c8_i32 : i32
    %4 = tpu.assume_multiple %3, 8 : i32
    %5 = arith.index_cast %4 : i32 to index
    %c0 = arith.constant 0 : index
    %6 = vector.load %arg16[%5, %c0] : memref<8x16xf32, #tpu.memory_space<vmem>>, vector<8x16xf32>
    %7 = arith.index_cast %4 : i32 to index
    %c0_1 = arith.constant 0 : index
    %8 = vector.load %arg17[%7, %c0_1] : memref<8x16xf32, #tpu.memory_space<vmem>>, vector<8x16xf32>
    %c0_2 = arith.constant 0 : index
    %c0_3 = arith.constant 0 : index
    %9 = vector.load %arg10[%c0_2, %c0_3] : memref<16x32xf32, #tpu.memory_space<vmem>>, vector<16x32xf32>
    %cst = arith.constant dense<0.000000e+00> : vector<8x32xf32>
    %10 = tpu.matmul %6, %9, %cst {dimension_numbers = #tpu.dot_dimension_numbers<[1], [0], [0], [1], [0, 0, 1, 1], [], []>} : vector<8x16xf32>, vector<16x32xf32>, vector<8x32xf32> -> vector<8x32xf32>
    %c0_4 = arith.constant 0 : index
    %c0_5 = arith.constant 0 : index
    %11 = vector.load %arg11[%c0_4, %c0_5] : memref<16x32xf32, #tpu.memory_space<vmem>>, vector<16x32xf32>
    %cst_6 = arith.constant dense<0.000000e+00> : vector<8x32xf32>
    %12 = tpu.matmul %8, %11, %cst_6 {dimension_numbers = #tpu.dot_dimension_numbers<[1], [0], [0], [1], [0, 0, 1, 1], [], []>} : vector<8x16xf32>, vector<16x32xf32>, vector<8x32xf32> -> vector<8x32xf32>
    %13 = arith.addf %10, %12 : vector<8x32xf32>
    %c0_7 = arith.constant 0 : index
    %c0_8 = arith.constant 0 : index
    %14 = vector.load %arg12[%c0_7, %c0_8] : memref<1x32xf32, #tpu.memory_space<vmem>>, vector<1x32xf32>
    %15 = vector.broadcast %14 : vector<1x32xf32> to vector<8x32xf32>
    %16 = arith.addf %13, %15 : vector<8x32xf32>
    %c0_9 = arith.constant 0 : index
    %c0_10 = arith.constant 0 : index
    %17 = vector.load %arg18[%c0_9, %c0_10] : memref<8x32xf32, #tpu.memory_space<vmem>>, vector<8x32xf32>
    %18 = vector.shape_cast %17 : vector<8x32xf32> to vector<8x1x32xf32>
    %19 = vector.shape_cast %16 : vector<8x32xf32> to vector<1x8x32xf32>
    %20 = vector.broadcast %18 : vector<8x1x32xf32> to vector<8x8x32xf32>
    %21 = vector.broadcast %19 : vector<1x8x32xf32> to vector<8x8x32xf32>
    %22 = arith.addf %20, %21 : vector<8x8x32xf32>
    %cst_11 = arith.constant 0.000000e+00 : f32
    %23 = vector.broadcast %cst_11 : f32 to vector<8x8x32xf32>
    %24 = arith.maximumf %22, %23 : vector<8x8x32xf32>
    %c0_12 = arith.constant 0 : index
    %c0_13 = arith.constant 0 : index
    %25 = vector.load %arg13[%c0_12, %c0_13] : memref<1x32xf32, #tpu.memory_space<vmem>>, vector<1x32xf32>
    %26 = vector.shape_cast %25 : vector<1x32xf32> to vector<1x1x32xf32>
    %27 = vector.broadcast %26 : vector<1x1x32xf32> to vector<8x8x32xf32>
    %28 = arith.mulf %24, %27 : vector<8x8x32xf32>
    %cst_14 = arith.constant dense<0.000000e+00> : vector<8x8xf32>
    %29 = vector.multi_reduction <add>, %28, %cst_14 [2] : vector<8x8x32xf32> to vector<8x8xf32>
    %c0_15 = arith.constant 0 : index
    %c0_16 = arith.constant 0 : index
    %30 = memref.load %arg14[%c0_15, %c0_16] : memref<1x1xf32, #tpu.memory_space<smem>>
    %31 = vector.broadcast %30 : f32 to vector<8x8xf32>
    %32 = arith.addf %29, %31 : vector<8x8xf32>
    %c0_17 = arith.constant 0 : index
    %c0_18 = arith.constant 0 : index
    %33 = vector.load %arg15[%c0_17, %c0_18] : memref<8x8xf32, #tpu.memory_space<vmem>>, vector<8x8xf32>
    tpu.vector_store %arg15[%c0_17, %c0_18], %32 {strides = array<i32>} : memref<8x8xf32, #tpu.memory_space<vmem>>, vector<8x8xf32>,
    return
  }
  func.func @transform_0(%arg0: i32, %arg1: i32) -> (i32, i32) {
    %c0_i32 = arith.constant 0 : i32
    %c0_i32_0 = arith.constant 0 : i32
    return %arg0, %c0_i32 : i32, i32
  }
  func.func @transform_1(%arg0: i32, %arg1: i32) -> (i32, i32) {
    %c0_i32 = arith.constant 0 : i32
    %c0_i32_0 = arith.constant 0 : i32
    %c0_i32_1 = arith.constant 0 : i32
    return %c0_i32, %c0_i32_0 : i32, i32
  }
  func.func @transform_2(%arg0: i32, %arg1: i32) -> (i32, i32) {
    %c0_i32 = arith.constant 0 : i32
    %c0_i32_0 = arith.constant 0 : i32
    %c0_i32_1 = arith.constant 0 : i32
    return %c0_i32, %c0_i32_0 : i32, i32
  }
  func.func @transform_3(%arg0: i32, %arg1: i32) -> (i32, i32) {
    %c0_i32 = arith.constant 0 : i32
    %c0_i32_0 = arith.constant 0 : i32
    %c0_i32_1 = arith.constant 0 : i32
    return %c0_i32, %c0_i32_0 : i32, i32
  }
  func.func @transform_4(%arg0: i32, %arg1: i32) -> (i32, i32) {
    %c0_i32 = arith.constant 0 : i32
    %c0_i32_0 = arith.constant 0 : i32
    %c0_i32_1 = arith.constant 0 : i32
    return %c0_i32, %c0_i32_0 : i32, i32
  }
  func.func @transform_5(%arg0: i32, %arg1: i32) -> (i32, i32) {
    %c0_i32 = arith.constant 0 : i32
    %c0_i32_0 = arith.constant 0 : i32
    %c0_i32_1 = arith.constant 0 : i32
    return %c0_i32, %c0_i32_0 : i32, i32
  }
  func.func @transform_6(%arg0: i32, %arg1: i32) -> (i32, i32) {
    %c0_i32 = arith.constant 0 : i32
    %c0_i32_0 = arith.constant 0 : i32
    %c0_i32_1 = arith.constant 0 : i32
    return %c0_i32, %c0_i32_0 : i32, i32
  }
  func.func @transform_7(%arg0: i32, %arg1: i32) -> (i32, i32) {
    %c0_i32 = arith.constant 0 : i32
    %c0_i32_0 = arith.constant 0 : i32
    %c0_i32_1 = arith.constant 0 : i32
    return %c0_i32, %c0_i32_0 : i32, i32
  }
  func.func @transform_8(%arg0: i32, %arg1: i32) -> (i32, i32) {
    %c0_i32 = arith.constant 0 : i32
    %c0_i32_0 = arith.constant 0 : i32
    %c0_i32_1 = arith.constant 0 : i32
    return %c0_i32, %c0_i32_0 : i32, i32
  }
  func.func @transform_9(%arg0: i32, %arg1: i32) -> (i32, i32) {
    %c0_i32 = arith.constant 0 : i32
    %c0_i32_0 = arith.constant 0 : i32
    %c0_i32_1 = arith.constant 0 : i32
    return %c0_i32, %c0_i32_0 : i32, i32
  }
  func.func @transform_10(%arg0: i32, %arg1: i32) -> (i32, i32) {
    %c0_i32 = arith.constant 0 : i32
    %c0_i32_0 = arith.constant 0 : i32
    %c0_i32_1 = arith.constant 0 : i32
    return %c0_i32, %c0_i32_0 : i32, i32
  }
  func.func @transform_11(%arg0: i32, %arg1: i32) -> (i32, i32) {
    %c0_i32 = arith.constant 0 : i32
    %c0_i32_0 = arith.constant 0 : i32
    %c0_i32_1 = arith.constant 0 : i32
    return %c0_i32, %c0_i32_0 : i32, i32
  }
  func.func @transform_12(%arg0: i32, %arg1: i32) -> (i32, i32) {
    %c0_i32 = arith.constant 0 : i32
    %c0_i32_0 = arith.constant 0 : i32
    %c0_i32_1 = arith.constant 0 : i32
    return %c0_i32, %c0_i32_0 : i32, i32
  }
  func.func @transform_13(%arg0: i32, %arg1: i32) -> (i32, i32) {
    %c0_i32 = arith.constant 0 : i32
    return %arg0, %arg1 : i32, i32
  }
}

</mosaic_0001>

<bundles_post_ra>
// kernel: tpu_custom_call.1
= control target key start
LH: loop header
LB: loop body
LE: loop exit
PB: predicated region body
PF: predicated region fallthrough
CT: control target
= control target key end

     0   :  { %s1766_s0 = inlined_call_operand.vmem [shape: f32[16,32], index: 0, kind: input, shape index: {}]   ;;  %s1767_s1 = inlined_call_operand.vmem [shape: f32[8,32], index: 1, kind: input, shape index: {}]   ;;  %s1768_s2 = inlined_call_operand.hbm [shape: f32[8,16], index: 2, kind: input, shape index: {}]   ;;  %s1769_s3 = inlined_call_operand.hbm [shape: f32[16,16], index: 3, kind: input, shape index: {}]   ;;  %s1770_s4 = inlined_call_operand.hbm [shape: f32[16,16], index: 4, kind: input, shape index: {}]   ;;  %s1771_s5 = inlined_call_operand.vmem [shape: f32[32,16], index: 5, kind: input, shape index: {}]   ;;  %s1772_s6 = inlined_call_operand.hbm [shape: f32[1,16], index: 6, kind: input, shape index: {}]   ;;  %s1773_s7 = inlined_call_operand.vmem [shape: f32[32,32], index: 7, kind: input, shape index: {}]   ;;  %s1774_s8 = inlined_call_operand.hbm [shape: f32[16,32], index: 8, kind: input, shape index: {}]   ;;  %s1775_s9 = inlined_call_operand.hbm [shape: f32[16,32], index: 9, kind: input, shape index: {}]   ;;  %s1776_s10 = inlined_call_operand.vmem [shape: f32[1,32], index: 10, kind: input, shape index: {}]   ;;  %s1777_s11 = inlined_call_operand.vmem [shape: f32[1,32], index: 11, kind: input, shape index: {}]   ;;  %s1778_s12 = inlined_call_operand.<no memory space> [shape: f32[1,1], index: 12, kind: input, shape index: {}]   ;;  %s1779_s13 = inlined_call_operand.vmem [shape: f32[16,8], index: 13, kind: output, shape index: {}]  }
   0x1   :  { %1781 = sst [smem:[#allocation21_spill]] %s1769_s3 }
   0x2   :  { %1782 = sst [smem:[#allocation22_spill]] %s1772_s6 }
   0x3   :  { %18 = sst [smem:[#allocation5]] %s1778_s12 }
   0x4   :  { %19 = vsyncpa [#allocation7], 0 }
   0x5   :  { %20 = vsyncpa [#allocation9], 0 }
   0x6   :  { %21 = vsyncpa [#allocation12], 0 }
   0x7   :  { %22 = vsyncpa [#allocation15], 0  ;;  %s1582_s27 = smov 0   ;;  %s1584_s28 = smov 0  }
   0x8   :  { %s1586_s29 = smov 0  }
   0x9 LB: > { %1783 = sst [smem:[#allocation20_spill]] %s1499_s29  ;;  %s1146_s15 = sadd.s32 4294967295, %s1499_s29   ;;  %s1499_s29 = sphi %s1586_s29, %s28_s29   ;;  %s1495_s28 = sphi %s1584_s28, %s1791_s28   ;;  %s1491_s27 = sphi %s1582_s27, %s1790_s27  }
   0xa   : > { %s1784_s3 = sld [smem:[#allocation21_spill]]  ;;  %p1148_p0 = scmp.ge.s32.totalorder %s1499_s29, 1 }
   0xb   : > { %p351_p1 = scmp.lt.s32.totalorder %s1499_s29, 3  ;;  %p1603_p2 = scmp.eq.s32.totalorder %s1146_s15, 0 }
   0xc   : > { %s1501_s18 = smov [#allocation8]   ;;  %s1787_s6 = sld [smem:[#allocation22_spill]] }
   0xd   : > { %p1607_p3 = pnand %p1148_p0, %p351_p1  ;;  %s379_s19 = sshll.u32 %s1501_s18, 4  ;;  %s380_s19 = int_to_ptr.vmem [resolvable:$true] %s379_s19 }
   0xe   : > { %s1502_s24 = smov [#allocation11]   ;;  %s1503_s26 = smov 128  }
   0xf   : > { %p1203_p4 = pneg %p1607_p3  ;;  %s411_s25 = sshll.u32 %s1502_s24, 4  ;;  %s412_s25 = int_to_ptr.vmem [resolvable:$true] %s411_s25 }
  0x10   : > { %s377_s14 = sshll.u32 %s1784_s3, 4  ;;  %s1504_s12 = smov 8   ;;  %s378_s14 = int_to_ptr.hbm [resolvable:$true] %s377_s14 }
  0x11   : > { %p1618_p5 = pnand %p1603_p2, %p1203_p4  ;;  %s366_s18 = sshll.u32 %s1768_s2, 4  ;;  %s367_s18 = int_to_ptr.hbm [resolvable:$true] %s366_s18 }
  0x12   : > { %s409_s22 = sshll.u32 %s1787_s6, 4  ;;  %s40_s20 = sadd.s32 1, %s1495_s28  ;;  %s410_s22 = int_to_ptr.hbm [resolvable:$true] %s409_s22 }
  0x13   : > { %1209 = dma.hbm_to_vmem [thread:$0]  (!%p1618_p5), %s378_s14, 256, %s380_s19, [#allocation9], %s1503_s26, %s1503_s26, %s1504_s12  }
  0x14   : > { %1215 = dma.hbm_to_vmem [thread:$0]  (!%p1618_p5), %s410_s22, 16, %s412_s25, [#allocation12]  }
  0x15   : > { %p42_p6 = scmp.ge.s32.totalorder %s40_s20, 2  ;;  %s1505_s21 = smov [#allocation6]  }
  0x16   : > { %s368_s24 = sshll.u32 %s1505_s21, 4  ;;  %s391_s29 = sshll.u32 %s1770_s4, 4  ;;  %s369_s24 = int_to_ptr.vmem [resolvable:$true] %s368_s24  ;;  %s392_s29 = int_to_ptr.hbm [resolvable:$true] %s391_s29 }
  0x17   : > { %s1793_s20 = smov (%p42_p6, %s40_s20), 0  ;;  %s423_s22 = sshll.u32 %s1774_s8, 4  ;;  %s424_s22 = int_to_ptr.hbm [resolvable:$true] %s423_s22 }
  0x18   : > { %1206 = dma.hbm_to_vmem [thread:$0]  (!%p1618_p5), %s367_s18, 128, %s369_s24, [#allocation7]  }
  0x19   : > { %s1506_s25 = smov [#allocation10]   ;;  %s1507_s3 = smov [#allocation13]  }
  0x1a   : > { %s393_s30 = sshll.u32 %s1506_s25, 4  ;;  %s425_s6 = sshll.u32 %s1507_s3, 4  ;;  %s394_s30 = int_to_ptr.vmem [resolvable:$true] %s393_s30  ;;  %s426_s6 = int_to_ptr.vmem [resolvable:$true] %s425_s6 }
  0x1b   : > { %1212 = dma.hbm_to_vmem [thread:$0]  (!%p1618_p5), %s392_s29, 256, %s394_s30, [#allocation9], %s1503_s26, %s1503_s26, %s1504_s12  }
  0x1c   : > { %s437_s18 = sshll.u32 %s1775_s9, 4  ;;  %s1508_s24 = smov [#allocation14]   ;;  %s438_s18 = int_to_ptr.hbm [resolvable:$true] %s437_s18 }
  0x1d   : > { %1218 = dma.hbm_to_vmem [thread:$0]  (!%p1618_p5), %s424_s22, 256, %s426_s6, [#allocation12], %s1503_s26, %s1503_s26, %s1504_s12  }
  0x1e   : > { %s439_s14 = sshll.u32 %s1508_s24, 4  ;;  %471 = sbr.rel (%p1607_p3) target bundleno = 1797 (0x705), region = 72  ;;  %s440_s14 = int_to_ptr.vmem [resolvable:$true] %s439_s14 }
  0x1f   : > { %1221 = dma.hbm_to_vmem [thread:$0]  (!%p1618_p5), %s438_s18, 256, %s440_s14, [#allocation15], %s1503_s26, %s1503_s26, %s1504_s12  }
  0x23   : > { %1474 = dma.done.wait (%p1603_p2), [#allocation7], 128  }
  0x24   : > { %1476 = vsyncadd (%p1603_p2), [#allocation7], 4294967168 }
  0x25   : > { %1478 = dma.done.wait (%p1603_p2), [#allocation9], 512  }
  0x26   : > { %1480 = vsyncadd (%p1603_p2), [#allocation9], 4294966784 }
  0x27   : > { %1482 = dma.done.wait (%p1603_p2), [#allocation12], 272  }
  0x28   : > { %1484 = vsyncadd (%p1603_p2), [#allocation12], 4294967024 }
  0x29   : > { %1486 = dma.done.wait (%p1603_p2), [#allocation15], 256  }
  0x2a   : > { %1488 = vsyncadd (%p1603_p2), [#allocation15], 4294967040  ;;  %v592_v0 = vld [vmem:[#allocation8 + $0x8] sm:$0xff]  ;;  %v591_v1 = vld [vmem:[#allocation8] sm:$0xff]  ;;  %vm593_vm0 = vcmask 130048   ;;  %vm659_vm5 = vcmask 64512  }
  0x2b   : > { %v557_v2 = vld [vmem:[#allocation6] sm:$0xff]  ;;  %611 = vmatpush.msra.mxu1 %v592_v0  ;;  %v561_v21 = vld [vmem:[%s1771_s5 + $0x10] sm:$0xff]  ;;  %v560_v22 = vld [vmem:[%s1771_s5 + $0x8] sm:$0xff]  ;;  %vm567_vm6 = vcmask 261120   ;;  %p542_p7 = scmp.lt.s32.totalorder %s1491_s27, 1  ;;  %s965_s30 = sld [smem:[#allocation5]] }
  0x2c   : > { %689 = vmatpush.msra.mxu3 %v557_v2  ;;  %v562_v20 = vld [vmem:[%s1771_s5 + $0x18] sm:$0xff]  ;;  %v559_v23 = vld [vmem:[%s1771_s5] sm:$0xff]  ;;  %v695_v31 = vld [vmem:[#allocation10] sm:$0xff]  ;;  %vm993_vm11 = vcmask 1041409   ;;  %vm995_vm12 = vcmask 1042434   ;;  %vm997_vm13 = vcmask 1043459  }
  0x2d   : > { %612 = vmatpush.msra.mxu1 %v591_v1  ;;  %583 = vmatpush.msra.mxu0 %v562_v20  ;;  %v558_v24 = vld [vmem:[%s1767_s1] sm:$0xff]  ;;  %v696_v30 = vld [vmem:[#allocation10 + $0x8] sm:$0xff]  ;;  %v832_v52 = vld [vmem:[#allocation13 + $0x8] sm:$0xff]  ;;  %s1795_s27 = smov (!%p542_p7, %s1491_s27), 1  ;;  %vm999_vm14 = vcmask 1044484   ;;  %vm1001_vm15 = vcmask 1045509  }
  0x2e   : > { %1166 = vmatmul.msk.f32.vlgmr.msra.gmra.mxu1 %vm593_vm0, %v557_v2  ;;  %v1266_v32 = vld [vmem:[#allocation11] ss:$0 sm:$0xff]  ;;  %714 = vmatpush.msrb.mxu3 %v696_v30  ;;  %v831_v53 = vld [vmem:[#allocation13] sm:$0xff]  ;;  %s1163_s3 = sshll.u32 %s1795_s27, 3 }
  0x2f   : > { %584 = vmatpush.msra.mxu0 %v561_v21  ;;  %s545_s17 = scalar_lea.vmem %s1766_s0, %s1163_s3  ;;  %s552_s21 = scalar_lea.vmem %s1779_s13, %s1163_s3 }
  0x30   : > { %715 = vmatpush.msrb.mxu3 %v695_v31  ;;  %v1268_v31 = vld [vmem:[%s1777_s11] ss:$0 sm:$0xff] }
  0x31   : > { %585 = vmatpush.msra.mxu0 %v560_v22 }
  0x33   : > { %586 = vmatpush.msra.mxu0 %v559_v23 }
  0x34   : > { %1165 = vmatmul.msk.f32.vlgmr.msra.gmra.mxu0 %vm567_vm6, %v558_v24 }
  0xab   : > { %v614_v3 = vpop.f32.mrf.mxu1 }
  0xac   : > { %v617_v4 = vmul.f32 %v614_v3, %v614_v3 }
  0xae   : > { %v618_v5 = vsel %vm593_vm0, %v617_v4, 0.0  ;;  %v800_v4 = vld [vmem:[%s1773_s7 + $0x10] sm:$0xff] }
  0xaf   : > { %619 = vadd.xlane.f32.xlu0 %v618_v5  ;;  %v799_v5 = vld [vmem:[%s1773_s7 + $0x8] sm:$0xff] }
  0xb1   : > { %v588_v33 = vpop.f32.mrf.mxu0 }
  0xb2   : > { %v589_v34 = vadd.f32 %v1266_v32, %v588_v33 }
 0x122   : > { %v620_v6 = vpop.xlane.xlu0 %619 }
 0x123   : > { %v621_v7 = vadd.f32 1e-12, %v620_v6  ;;  %v834_v6 = vld [vmem:[#allocation14 + $0x8] sm:$0xff] }
 0x125   : > { %1269 = vrsqrt.f32 %v621_v7  ;;  %vm628_vm2 = vweird.f32 %v621_v7 }
 0x12b   : > { %v1270_v8 = vpop.eup %1269 }
 0x12c   : > { %v623_v9 = vmul.f32 %v1270_v8, %v621_v7  ;;  %vm629_vm1 = vweird.f32 %v1270_v8  ;;  %v833_v7 = vld [vmem:[#allocation14] sm:$0xff] }
 0x12d   : > { %vm630_vm3 = vmor %vm628_vm2, %vm629_vm1  ;;  %vm1005_vm1 = vcmask 1047559  }
 0x12e   : > { %v624_v10 = vmul.f32 %v1270_v8, %v623_v9  ;;  %v797_v9 = vld [vmem:[%s545_s17] sm:$0xff] }
 0x130   : > { %v625_v11 = vmul.f32 0.5, %v624_v10 }
 0x132   : > { %v626_v12 = vsub.f32 1.5, %v625_v11 }
 0x134   : > { %v627_v13 = vmul.f32 %v1270_v8, %v626_v12 }
 0x136   : > { %v631_v14 = vsel %vm630_vm3, %v1270_v8, %v627_v13  ;;  %v798_v8 = vld [vmem:[%s1773_s7] sm:$0xff] }
 0x137   : > { %v632_v15 = vmul.f32 %v631_v14, %v614_v3  ;;  %v801_v3 = vld [vmem:[%s1773_s7 + $0x18] sm:$0xff] }
 0x138   : > { %817 = vmatpush.msrb.mxu0 %v801_v3  ;;  %v983_v3 = vlaneseq }
 0x139   : > { %1167 = vmatpush.xpose.msk.msra.mxu2 %vm593_vm0, %v632_v15 }
 0x13a   : > { %818 = vmatpush.msrb.mxu0 %v800_v4  ;;  %v966_v4 = vstv %s965_s30 }
 0x13c   : > { %1168 = vmatmul.msk.f32.vlgmr.msra.gmra.mxu2 %vm593_vm0, %v632_v15  ;;  %819 = vmatpush.msrb.mxu0 %v799_v5 }
 0x13d   : > { %791 = vmatpush.msrb.mxu2 %v589_v34 }
 0x13e   : > { %820 = vmatpush.msrb.mxu0 %v798_v8  ;;  %v984_v8 = vand.u32 127, %v983_v3 }
 0x13f   : > { %1174 = vmatmul.msk.f32.vlgmr.msrb.gmra.mxu0 %vm567_vm6, %v797_v9 }
 0x1bc   : > { %v822_v12 = vpop.f32.mrf.mxu0 }
 0x1bd   : > { %825 = vst.msk [vmem:[#allocation4] sm:$0xff] %vm567_vm6, %v822_v12 }
 0x1bf   : > { %v653_v16 = vpop.f32.mrf.mxu2 }
 0x1c0   : > { %vm656_vm4 = vcmp.gt.f32.partialorder %v653_v16, 0.76604444 }
 0x1c1   : > { %v657_v17 = vsel %vm656_vm4, %v653_v16, -9e+15 }
 0x1c2   : > { %v658_v18 = vmul.f32 5.0, %v657_v17  ;;  %v1267_v17 = vld [vmem:[%s1776_s10] ss:$0 sm:$0xff] }
 0x1c4   : > { %v660_v19 = vsel %vm659_vm5, %v658_v18, -inf  ;;  %v887_v13 = vld [vmem:[#allocation4] sm:$0xff] }
 0x1c5   : > { %661 = vmax.xlane.f32.xlu0 %v660_v19  ;;  %v890_v14 = vrot.slane %v887_v13, 2  ;;  %v889_v15 = vrot.slane %v887_v13, 1  ;;  %v893_v16 = vrot.slane %v887_v13, 5  ;;  %v891_v21 = vrot.slane %v887_v13, 3 }
 0x1c7   : > { %v898_v23 = vperm.slane %v890_v14, 0  ;;  %v897_v24 = vperm.slane %v889_v15, 0 }
 0x238   : > { %v662_v25 = vpop.xlane.xlu0 %661 }
 0x239   : > { %v663_v26 = vsub.f32 %v658_v18, %v662_v25  ;;  %v892_v18 = vrot.slane %v887_v13, 4  ;;  %v896_v25 = vperm.slane %v887_v13, 0 }
 0x23b   : > { %v664_v27 = vmul.f32 1.442695, %v663_v26  ;;  %v901_v26 = vperm.slane %v893_v16, 0 }
 0x23d   : > { %1271 = vpow2.f32 %v664_v27 }
 0x243   : > { %v1272_v28 = vpop.eup %1271 }
 0x244   : > { %v666_v29 = vsel %vm659_vm5, %v1272_v28, 0.0 }
 0x245   : > { %667 = vadd.xlane.f32.xlu1 %v666_v29  ;;  %v899_v29 = vperm.slane %v891_v21, 0 }
 0x2b8   : > { %v668_v35 = vpop.xlane.xlu1 %667 }
 0x2b9   : > { %1273 = vrcp.f32 %v668_v35  ;;  %v895_v35 = vrot.slane %v887_v13, 7 }
 0x2bf   : > { %v1274_v36 = vpop.eup %1273 }
 0x2c0   : > { %v670_v37 = vmul.f32 %v1274_v36, %v1272_v28  ;;  %v900_v28 = vperm.slane %v892_v18, 0 }
 0x2c2   : > { %1169 = vmatmul.msk.f32.vlgmr.msra.gmra.mxu3 %vm659_vm5, %v670_v37 }
 0x2c3   : > { %853 = vmatpush.msra.mxu3 %v834_v6 }
 0x2c5   : > { %854 = vmatpush.msra.mxu3 %v833_v7 }
 0x2ca   : > { %1170 = vmatmul.msk.f32.vlgmr.msrb.gmra.mxu3 %vm593_vm0, %v589_v34 }
 0x345   : > { %v691_v38 = vpop.f32.mrf.mxu3 }
 0x346   : > { %694 = vst.msk [vmem:[#allocation2] sm:$0xff] %vm593_vm0, %v691_v38 }
 0x34d   : > { %v717_v39 = vpop.f32.mrf.mxu3  ;;  %v828_v54 = vld [vmem:[#allocation2] sm:$0xff] }
 0x34e   : > { %v720_v40 = vmul.f32 %v717_v39, %v717_v39 }
 0x350   : > { %v721_v41 = vsel %vm593_vm0, %v720_v40, 0.0 }
 0x351   : > { %722 = vadd.xlane.f32.xlu1 %v721_v41  ;;  %v894_v41 = vrot.slane %v887_v13, 6 }
 0x3c4   : > { %v723_v42 = vpop.xlane.xlu1 %722 }
 0x3c5   : > { %v724_v43 = vadd.f32 1e-12, %v723_v42 }
 0x3c7   : > { %1275 = vrsqrt.f32 %v724_v43  ;;  %vm731_vm8 = vweird.f32 %v724_v43 }
 0x3cd   : > { %v1276_v44 = vpop.eup %1275 }
 0x3ce   : > { %v726_v45 = vmul.f32 %v1276_v44, %v724_v43  ;;  %vm732_vm7 = vweird.f32 %v1276_v44 }
 0x3cf   : > { %vm733_vm9 = vmor %vm731_vm8, %vm732_vm7 }
 0x3d0   : > { %v727_v46 = vmul.f32 %v1276_v44, %v726_v45 }
 0x3d2   : > { %v728_v47 = vmul.f32 0.5, %v727_v46  ;;  %v903_v46 = vperm.slane %v895_v35, 0 }
 0x3d4   : > { %v729_v48 = vsub.f32 1.5, %v728_v47 }
 0x3d6   : > { %v730_v49 = vmul.f32 %v1276_v44, %v729_v48 }
 0x3d8   : > { %v734_v50 = vsel %vm733_vm9, %v1276_v44, %v730_v49 }
 0x3d9   : > { %v735_v51 = vmul.f32 %v734_v50, %v717_v39 }
 0x3db   : > { %1171 = vmatpush.xpose.msk.msrb.mxu1 %vm593_vm0, %v735_v51 }
 0x3de   : > { %1172 = vmatmul.msk.f32.vlgmr.msrb.gmra.mxu1 %vm593_vm0, %v735_v51 }
 0x3df   : > { %876 = vmatpush.msra.mxu1 %v832_v52  ;;  %v902_v52 = vperm.slane %v894_v41, 0 }
 0x3e1   : > { %877 = vmatpush.msra.mxu1 %v831_v53 }
 0x3e6   : > { %1176 = vmatmul.msk.f32.vlgmr.msra.gmra.mxu1 %vm593_vm0, %v828_v54 }
 0x45b   : > { %v756_v55 = vpop.f32.mrf.mxu1 }
 0x45c   : > { %vm759_vm10 = vcmp.gt.f32.partialorder %v756_v55, 0.76604444 }
 0x45d   : > { %v760_v56 = vsel %vm759_vm10, %v756_v55, -9e+15 }
 0x45e   : > { %v761_v57 = vmul.f32 5.0, %v760_v56 }
 0x460   : > { %v762_v58 = vsel %vm659_vm5, %v761_v57, -inf }
 0x461   : > { %763 = vmax.xlane.f32.xlu2 %v762_v58 }
 0x463   : > { %v879_v19 = vpop.f32.mrf.mxu1 }
 0x4d4   : > { %v764_v59 = vpop.xlane.xlu2 %763 }
 0x4d5   : > { %v765_v60 = vsub.f32 %v761_v57, %v764_v59 }
 0x4d7   : > { %v766_v61 = vmul.f32 1.442695, %v765_v60 }
 0x4d9   : > { %1277 = vpow2.f32 %v766_v61 }
 0x4df   : > { %v1278_v62 = vpop.eup %1277 }
 0x4e0   : > { %v768_v63 = vsel %vm659_vm5, %v1278_v62, 0.0 }
 0x4e1   : > { %769 = vadd.xlane.f32.xlu2 %v768_v63 }
 0x554   : > { %v770_v0 = vpop.xlane.xlu2 %769 }
 0x555   : > { %1279 = vrcp.f32 %v770_v0 }
 0x55b   : > { %v1280_v1 = vpop.eup %1279 }
 0x55c   : > { %v772_v2 = vmul.f32 %v1280_v1, %v1278_v62 }
 0x55e   : > { %1173 = vmatmul.msk.f32.vlgmr.msrb.gmra.mxu2 %vm659_vm5, %v772_v2 }
 0x5e1   : > { %v793_v10 = vpop.f32.mrf.mxu2 }
 0x5e2   : > { %796 = vst.msk [vmem:[#allocation3] sm:$0xff] %vm593_vm0, %v793_v10 }
 0x5e9   : > { %v830_v11 = vld [vmem:[#allocation3] sm:$0xff] }
 0x5ea   : > { %1175 = vmatmul.msk.f32.vlgmr.msra.gmra.mxu3 %vm593_vm0, %v830_v11  ;;  %vm1003_vm0 = vcmask 1046534  }
 0x66d   : > { %v856_v20 = vpop.f32.mrf.mxu3 }
 0x66e   : > { %v880_v22 = vadd.f32 %v879_v19, %v856_v20 }
 0x670   : > { %v886_v27 = vadd.f32 %v1267_v17, %v880_v22 }
 0x672   : > { %v914_v30 = vadd.f32 %v898_v23, %v886_v27  ;;  %v913_v32 = vadd.f32 %v897_v24, %v886_v27  ;;  %v912_v33 = vadd.f32 %v896_v25, %v886_v27  ;;  %v917_v34 = vadd.f32 %v901_v26, %v886_v27 }
 0x673   : > { %v916_v39 = vadd.f32 %v900_v28, %v886_v27  ;;  %v915_v40 = vadd.f32 %v899_v29, %v886_v27  ;;  %v919_v55 = vadd.f32 %v903_v46, %v886_v27  ;;  %v918_v57 = vadd.f32 %v902_v52, %v886_v27 }
 0x674   : > { %v922_v36 = vmax.f32 %v914_v30, 0.0  ;;  %v921_v37 = vmax.f32 %v913_v32, 0.0  ;;  %v920_v38 = vmax.f32 %v912_v33, 0.0  ;;  %v925_v45 = vmax.f32 %v917_v34, 0.0 }
 0x675   : > { %v924_v50 = vmax.f32 %v916_v39, 0.0  ;;  %v923_v51 = vmax.f32 %v915_v40, 0.0  ;;  %v927_v60 = vmax.f32 %v919_v55, 0.0  ;;  %v926_v62 = vmax.f32 %v918_v57, 0.0 }
 0x676   : > { %v934_v42 = vmul.f32 %v1268_v31, %v922_v36  ;;  %v933_v43 = vmul.f32 %v1268_v31, %v921_v37  ;;  %v932_v44 = vmul.f32 %v1268_v31, %v920_v38  ;;  %v937_v53 = vmul.f32 %v1268_v31, %v925_v45 }
 0x677   : > { %v936_v54 = vmul.f32 %v1268_v31, %v924_v50  ;;  %v935_v56 = vmul.f32 %v1268_v31, %v923_v51  ;;  %v939_v63 = vmul.f32 %v1268_v31, %v927_v60  ;;  %v938_v0 = vmul.f32 %v1268_v31, %v926_v62 }
 0x678   : > { %v947_v47 = vsel %vm567_vm6, %v934_v42, 0.0  ;;  %v944_v48 = vsel %vm567_vm6, %v933_v43, 0.0  ;;  %v941_v49 = vsel %vm567_vm6, %v932_v44, 0.0  ;;  %v956_v58 = vsel %vm567_vm6, %v937_v53, 0.0 }
 0x679   : > { %948 = vadd.xlane.f32.xlu2 %v947_v47  ;;  %945 = vadd.xlane.f32.xlu1 %v944_v48  ;;  %v953_v59 = vsel %vm567_vm6, %v936_v54, 0.0  ;;  %v950_v61 = vsel %vm567_vm6, %v935_v56, 0.0  ;;  %v962_v1 = vsel %vm567_vm6, %v939_v63, 0.0  ;;  %v959_v2 = vsel %vm567_vm6, %v938_v0, 0.0 }
 0x67a   : > { %942 = vadd.xlane.f32.xlu0 %v941_v49 }
 0x681   : > { %957 = vadd.xlane.f32.xlu2 %v956_v58  ;;  %954 = vadd.xlane.f32.xlu1 %v953_v59 }
 0x682   : > { %951 = vadd.xlane.f32.xlu0 %v950_v61 }
 0x689   : > { %963 = vadd.xlane.f32.xlu1 %v962_v1 }
 0x68a   : > { %960 = vadd.xlane.f32.xlu0 %v959_v2 }
 0x6ec   : > { %v946_v5 = vpop.xlane.xlu1 %945  ;;  %v949_v7 = vpop.xlane.xlu2 %948 }
 0x6ed   : > { %v943_v6 = vpop.xlane.xlu0 %942  ;;  %v968_v9 = vadd.f32 %v966_v4, %v946_v5  ;;  %v969_v11 = vadd.f32 %v966_v4, %v949_v7 }
 0x6ee   : > { %v967_v10 = vadd.f32 %v966_v4, %v943_v6 }
 0x6ef   : > { %v986_v12 = vperm.slane %v968_v9, %v984_v8  ;;  %v987_v16 = vperm.slane %v969_v11, %v984_v8 }
 0x6f0   : > { %v985_v13 = vperm.slane %v967_v10, %v984_v8 }
 0x6f2   : > { %v994_v19 = vsel %vm993_vm11, %v986_v12, %v985_v13 }
 0x6f3   : > { %v996_v23 = vsel %vm995_vm12, %v987_v16, %v994_v19 }
 0x6f4   : > { %v955_v14 = vpop.xlane.xlu1 %954  ;;  %v958_v20 = vpop.xlane.xlu2 %957 }
 0x6f5   : > { %v952_v15 = vpop.xlane.xlu0 %951  ;;  %v971_v17 = vadd.f32 %v966_v4, %v955_v14  ;;  %v972_v24 = vadd.f32 %v966_v4, %v958_v20 }
 0x6f6   : > { %v970_v18 = vadd.f32 %v966_v4, %v952_v15 }
 0x6f7   : > { %v989_v22 = vperm.slane %v971_v17, %v984_v8  ;;  %v990_v31 = vperm.slane %v972_v24, %v984_v8 }
 0x6f8   : > { %v988_v21 = vperm.slane %v970_v18, %v984_v8 }
 0x6fa   : > { %v998_v25 = vsel %vm997_vm13, %v988_v21, %v996_v23 }
 0x6fb   : > { %v1000_v29 = vsel %vm999_vm14, %v989_v22, %v998_v25 }
 0x6fc   : > { %v964_v26 = vpop.xlane.xlu1 %963  ;;  %v1002_v34 = vsel %vm1001_vm15, %v990_v31, %v1000_v29 }
 0x6fd   : > { %v974_v27 = vadd.f32 %v966_v4, %v964_v26  ;;  %v961_v28 = vpop.xlane.xlu0 %960 }
 0x6fe   : > { %v973_v30 = vadd.f32 %v966_v4, %v961_v28 }
 0x6ff   : > { %v992_v32 = vperm.slane %v974_v27, %v984_v8 }
 0x700   : > { %v991_v33 = vperm.slane %v973_v30, %v984_v8 }
 0x702   : > { %v1004_v35 = vsel %vm1003_vm0, %v991_v33, %v1002_v34 }
 0x703   : > { %v1006_v36 = vsel %vm1005_vm1, %v992_v32, %v1004_v35 }
 0x704   : > { %1009 = vst.msk [vmem:[%s552_s21] sm:$0xff] %vm659_vm5, %v1006_v36 }
 0x705 PF: > { %s1789_s18 = sld [smem:[#allocation20_spill]]  ;;  %s1790_s27 = smov %s1495_s28 }
 0x706   : > { %s1791_s28 = smov %s1793_s20 }
 0x70b   : > { %s28_s29 = sadd.s32 1, %s1789_s18  }
 0x70c   : > { %p25_p8 = scmp.ge.s32.totalorder %s28_s29, 4  }
 0x70e   :  { %27 = sbr.rel (!%p25_p8) target bundleno = 9 (0x9), region = 133 }
 0x713   :  { %1035 = vsyncpa [#allocation7], 1 }
 0x714   :  { %1037 = vsyncpa [#allocation7 + $0x1], 1 }
 0x715   :  { %1038 = vsyncpa [#allocation9], 1 }
 0x716   :  { %1039 = vsyncpa [#allocation12], 1 }
 0x717   :  { %1040 = vsyncpa [#allocation15], 1 }

</bundles_post_ra>
